<compile_context>
chip_gen: v5e
topology: v5e:2x2
jax: 0.10.0
libtpu: 0.0.40
codegen_flags: <defaults>
</compile_context>

<pallas_src>
import functools
import math

import jax
import jax.numpy as jnp
from jax.experimental import pallas as pl
from jax.experimental.pallas import tpu as pltpu


def _mha_kernel(x_ref, wqkv_ref, wo_ref, bo_ref, o_ref, acc_ref, *,
                head_dim, q_tile, compute_dtype):
    qi = pl.program_id(1)
    h = pl.program_id(2)
    num_heads = pl.num_programs(2)

    q_start = pl.multiple_of(qi * q_tile, q_tile)
    hd = head_dim
    T = x_ref.shape[1]

    @pl.when(h == 0)
    def _():
        acc_ref[...] = jnp.zeros_like(acc_ref)

    # Fused per-head QKV weight block: columns [Wq_h | Wk_h | Wv_h].
    w_h = wqkv_ref[0]                                                 # (D_in, 3*hd)

    # K/V need the full sequence; Q only needs the current query-tile rows.
    x_full = x_ref[0].astype(compute_dtype)                           # (T, D_in)
    x_q = x_ref[0, pl.ds(q_start, q_tile), :].astype(compute_dtype)   # (TQ, D_in)

    kv = jnp.dot(x_full, w_h[:, hd:], preferred_element_type=jnp.float32)  # (T, 2*hd)
    q = jnp.dot(x_q, w_h[:, :hd], preferred_element_type=jnp.float32)      # (TQ, hd)
    k = kv[:, :hd].astype(compute_dtype)
    v = kv[:, hd:].astype(compute_dtype)

    # Scale Q once on the small (TQ, hd) tile instead of the (TQ, T) scores.
    q = (q * (1.0 / math.sqrt(hd))).astype(compute_dtype)

    # Scores: contract over head_dim directly -- no explicit K transpose.
    s = jax.lax.dot_general(
        q, k, dimension_numbers=(((1,), (1,)), ((), ())),
        preferred_element_type=jnp.float32)                           # (TQ, T)

    # Causal mask for this query tile only.
    row = q_start + jax.lax.broadcasted_iota(jnp.int32, (q_tile, T), 0)
    col = jax.lax.broadcasted_iota(jnp.int32, (q_tile, T), 1)
    s = jnp.where(col <= row, s, -jnp.inf)

    # Numerically-stable softmax in f32; reciprocal on the EUP slot.
    m = jnp.max(s, axis=-1, keepdims=True)
    e = jnp.exp(s - m)
    denom = jnp.sum(e, axis=-1, keepdims=True)
    w = e * pl.reciprocal(denom, approx=True)

    # TODO(synk): training-mode dropout on attention weights not implemented
    # (inference: identity).

    ctx = jnp.dot(w.astype(compute_dtype), v,
                  preferred_element_type=jnp.float32)                 # (TQ, hd)

    # This head's slice of the output projection, accumulated over the head axis.
    acc_ref[...] += jnp.dot(ctx.astype(compute_dtype), wo_ref[0],
                            preferred_element_type=jnp.float32)       # (TQ, D_out)

    @pl.when(h == num_heads - 1)
    def _():
        o_ref[0] = (acc_ref[...] + bo_ref[...]).astype(o_ref.dtype)


def multihead_attention(x, wq, wk, wv, wo, bo, *, num_heads, q_tile=None,
                        compute_dtype=jnp.bfloat16):
    """x: (B, T, D_in); wq/wk/wv: (D_in, D_out); wo: (D_out, D_out); bo: (1, D_out)."""
    B, T, D_in = x.shape
    D_out = wq.shape[1]
    assert D_out % num_heads == 0, "d_out must be divisible by num_heads"
    hd = D_out // num_heads

    if q_tile is None:
        if T <= 256:
            q_tile = T
        else:
            q_tile = next((c for c in (256, 128, 64, 32, 16, 8) if T % c == 0), T)
    assert T % q_tile == 0, "T must be divisible by q_tile"
    n_q = T // q_tile

    # Pack the three projections into one fused per-head weight tensor
    # (H, D_in, 3*hd) with columns [Wq_h | Wk_h | Wv_h]; out_proj rows split per
    # head -> (H, hd, D_out).  MXU operands live in `compute_dtype` (bf16 on
    # v6e/v7x); all accumulation stays in f32.
    wq_h = jnp.swapaxes(wq.reshape(D_in, num_heads, hd), 0, 1)
    wk_h = jnp.swapaxes(wk.reshape(D_in, num_heads, hd), 0, 1)
    wv_h = jnp.swapaxes(wv.reshape(D_in, num_heads, hd), 0, 1)
    wqkv = jnp.concatenate([wq_h, wk_h, wv_h], axis=-1).astype(compute_dtype)  # (H, D_in, 3*hd)
    wo_h = wo.reshape(num_heads, hd, D_out).astype(compute_dtype)              # (H, hd, D_out)
    bo_f32 = bo.astype(jnp.float32).reshape(1, D_out)

    kernel = functools.partial(_mha_kernel, head_dim=hd, q_tile=q_tile,
                               compute_dtype=compute_dtype)

    # Explicit VMEM budget from the tile sizes (double-buffered blocks plus
    # in-kernel intermediates), clamped below every generation's physical VMEM
    # (v7x = 64 MiB).
    w_item = jnp.dtype(compute_dtype).itemsize
    block_bytes = (T * D_in * x.dtype.itemsize          # x block
                   + D_in * 3 * hd * w_item             # fused QKV weight block
                   + hd * D_out * w_item                # out_proj weight block
                   + D_out * 4                          # bias
                   + q_tile * D_out * x.dtype.itemsize)  # output block
    interm_bytes = 4 * (T * 2 * hd + q_tile * hd + 3 * q_tile * T + 2 * q_tile * D_out)
    est = 2 * block_bytes + interm_bytes + q_tile * D_out * 4  # + f32 accumulator
    vmem_limit = int(min(max(2 * est, 32 * 1024 * 1024), 56 * 1024 * 1024))

    return pl.pallas_call(
        kernel,
        out_shape=jax.ShapeDtypeStruct((B, T, D_out), x.dtype),
        grid_spec=pltpu.PrefetchScalarGridSpec(
            num_scalar_prefetch=0,
            grid=(B, n_q, num_heads),
            in_specs=[
                pl.BlockSpec((1, T, D_in), lambda b, qi, h: (b, 0, 0)),       # x (full seq)
                pl.BlockSpec((1, D_in, 3 * hd), lambda b, qi, h: (h, 0, 0)),  # fused QKV weights
                pl.BlockSpec((1, hd, D_out), lambda b, qi, h: (h, 0, 0)),     # out_proj rows
                pl.BlockSpec((1, D_out), lambda b, qi, h: (0, 0)),            # out_proj bias
            ],
            out_specs=pl.BlockSpec((1, q_tile, D_out), lambda b, qi, h: (b, qi, 0)),
            scratch_shapes=[pltpu.VMEM((q_tile, D_out), jnp.float32)],
        ),
        compiler_params=pltpu.CompilerParams(
            dimension_semantics=("parallel", "parallel", "arbitrary"),
            vmem_limit_bytes=vmem_limit,
        ),
    )(x, wqkv, wo_h, bo_f32)


def _reference(x, wq, wk, wv, wo, bo, *, num_heads):
    B, T, D_in = x.shape
    D_out = wq.shape[1]
    hd = D_out // num_heads
    q = (x @ wq).reshape(B, T, num_heads, hd).transpose(0, 2, 1, 3)
    k = (x @ wk).reshape(B, T, num_heads, hd).transpose(0, 2, 1, 3)
    v = (x @ wv).reshape(B, T, num_heads, hd).transpose(0, 2, 1, 3)
    s = jnp.einsum("bhqd,bhkd->bhqk", q, k) / math.sqrt(hd)
    mask = jnp.triu(jnp.ones((T, T), bool), k=1)
    s = jnp.where(mask[None, None], -jnp.inf, s)
    w = jax.nn.softmax(s, axis=-1)
    ctx = jnp.einsum("bhqk,bhkd->bhqd", w, v).transpose(0, 2, 1, 3).reshape(B, T, D_out)
    return ctx @ wo + bo


if __name__ == "__main__":
    # Small deterministic problem; D_out chosen lane-dense (multiple of 128).
    B, T, D_in, D_out, num_heads = 2, 8, 128, 128, 4
    context_length = T
    dropout_p = 0.0  # inference / identity dropout

    key = jax.random.PRNGKey(0)
    kx, kq, kk, kv, ko, kb = jax.random.split(key, 6)

    x = jax.random.normal(kx, (B, T, D_in), dtype=jnp.float32)
    # Linear weights stored as (in, out) = PyTorch W.T; qkv_bias=False.
    wq = jax.random.normal(kq, (D_in, D_out), dtype=jnp.float32) * 0.05
    wk = jax.random.normal(kk, (D_in, D_out), dtype=jnp.float32) * 0.05
    wv = jax.random.normal(kv, (D_in, D_out), dtype=jnp.float32) * 0.05
    wo = jax.random.normal(ko, (D_out, D_out), dtype=jnp.float32) * 0.05
    bo = jax.random.normal(kb, (1, D_out), dtype=jnp.float32) * 0.05

    ref = _reference(x, wq, wk, wv, wo, bo, num_heads=num_heads)

    # f32 MXU path (tolerance accounts for approx reciprocal + default MXU precision).
    out_f32 = multihead_attention(x, wq, wk, wv, wo, bo, num_heads=num_heads,
                                  compute_dtype=jnp.float32)
    out_f32 = jax.block_until_ready(out_f32)
    assert out_f32.shape == (B, T, D_out)
    assert jnp.allclose(out_f32, ref, atol=5e-3, rtol=5e-3), "f32 mismatch vs reference"

    # bf16 MXU path (v6e/v7x fast path; bf16 operand tolerance).
    out_bf16 = multihead_attention(x, wq, wk, wv, wo, bo, num_heads=num_heads,
                                   compute_dtype=jnp.bfloat16)
    out_bf16 = jax.block_until_ready(out_bf16)
    assert out_bf16.shape == (B, T, D_out)
    assert jnp.allclose(out_bf16, ref, atol=5e-2, rtol=5e-2), "bf16 mismatch vs reference"

    print("KERNEL_OK")
</pallas_src>

<mosaic_0001>
module attributes {stable_mosaic.version = 11 : i64} {
  func.func @_mha_kernel(%arg0: i32, %arg1: i32, %arg2: i32, %arg3: memref<1x8x128xf32, #tpu.memory_space<vmem>>, %arg4: memref<1x128x96xf32, #tpu.memory_space<vmem>>, %arg5: memref<1x32x128xf32, #tpu.memory_space<vmem>>, %arg6: memref<1x128xf32, #tpu.memory_space<vmem>>, %arg7: memref<1x8x128xf32, #tpu.memory_space<vmem>>, %arg8: memref<8x128xf32, #tpu.memory_space<vmem>>) attributes {dimension_semantics = [#tpu.dimension_semantics<parallel>, #tpu.dimension_semantics<parallel>, #tpu.dimension_semantics<arbitrary>], iteration_bounds = array<i64: 2, 1, 4>, scalar_prefetch = 0 : i64, scratch_operands = 1 : i64, tpu.core_type = #tpu.core_type<tc>, window_params = [{transform_indices = @transform_0, window_bounds = array<i64: 1, 8, 128>}, {transform_indices = @transform_1, window_bounds = array<i64: 1, 128, 96>}, {transform_indices = @transform_2, window_bounds = array<i64: 1, 32, 128>}, {pipeline_mode = #tpu.pipeline_mode<synchronous>, transform_indices = @transform_3, window_bounds = array<i64: 1, 128>}, {transform_indices = @transform_4, window_bounds = array<i64: 1, 8, 128>}]} {
    %c8_i32 = arith.constant 8 : i32
    %0 = arith.muli %arg1, %c8_i32 : i32
    %1 = tpu.assume_multiple %0, 8 : i32
    %c0_i32 = arith.constant 0 : i32
    %2 = arith.cmpi eq, %arg2, %c0_i32 : i32
    %3 = arith.extui %2 : i1 to i32
    %c0_i32_0 = arith.constant 0 : i32
    %4 = arith.cmpi ne, %3, %c0_i32_0 : i32
    scf.if %4 {
      %cst_24 = arith.constant 0.000000e+00 : f32
      %48 = vector.broadcast %cst_24 : f32 to vector<8x128xf32>
      %c0_25 = arith.constant 0 : index
      %c0_26 = arith.constant 0 : index
      %49 = vector.load %arg8[%c0_25, %c0_26] : memref<8x128xf32, #tpu.memory_space<vmem>>, vector<8x128xf32>
      tpu.vector_store %arg8[%c0_25, %c0_26], %48 {strides = array<i32>} : memref<8x128xf32, #tpu.memory_space<vmem>>, vector<8x128xf32>,
    } else {
    }
    %c0 = arith.constant 0 : index
    %c0_1 = arith.constant 0 : index
    %c0_2 = arith.constant 0 : index
    %5 = vector.load %arg4[%c0, %c0_1, %c0_2] : memref<1x128x96xf32, #tpu.memory_space<vmem>>, vector<1x128x96xf32>
    %6 = vector.shape_cast %5 : vector<1x128x96xf32> to vector<128x96xf32>
    %c0_3 = arith.constant 0 : index
    %c0_4 = arith.constant 0 : index
    %c0_5 = arith.constant 0 : index
    %7 = vector.load %arg3[%c0_3, %c0_4, %c0_5] : memref<1x8x128xf32, #tpu.memory_space<vmem>>, vector<1x8x128xf32>
    %8 = vector.shape_cast %7 : vector<1x8x128xf32> to vector<8x128xf32>
    %c0_6 = arith.constant 0 : index
    %9 = arith.index_cast %1 : i32 to index
    %c0_7 = arith.constant 0 : index
    %10 = vector.load %arg3[%c0_6, %9, %c0_7] : memref<1x8x128xf32, #tpu.memory_space<vmem>>, vector<1x8x128xf32>
    %11 = vector.shape_cast %10 : vector<1x8x128xf32> to vector<8x128xf32>
    %12 = vector.extract_strided_slice %6 {offsets = [0, 32], sizes = [128, 64], strides = [1, 1]} : vector<128x96xf32> to vector<128x64xf32>
    %cst = arith.constant dense<0.000000e+00> : vector<8x64xf32>
    %13 = tpu.matmul %8, %12, %cst {dimension_numbers = #tpu.dot_dimension_numbers<[1], [0], [0], [1], [0, 0, 1, 1], [], []>} : vector<8x128xf32>, vector<128x64xf32>, vector<8x64xf32> -> vector<8x64xf32>
    %14 = vector.extract_strided_slice %6 {offsets = [0, 0], sizes = [128, 32], strides = [1, 1]} : vector<128x96xf32> to vector<128x32xf32>
    %cst_8 = arith.constant dense<0.000000e+00> : vector<8x32xf32>
    %15 = tpu.matmul %11, %14, %cst_8 {dimension_numbers = #tpu.dot_dimension_numbers<[1], [0], [0], [1], [0, 0, 1, 1], [], []>} : vector<8x128xf32>, vector<128x32xf32>, vector<8x32xf32> -> vector<8x32xf32>
    %16 = vector.extract_strided_slice %13 {offsets = [0, 0], sizes = [8, 32], strides = [1, 1]} : vector<8x64xf32> to vector<8x32xf32>
    %17 = vector.extract_strided_slice %13 {offsets = [0, 32], sizes = [8, 32], strides = [1, 1]} : vector<8x64xf32> to vector<8x32xf32>
    %cst_9 = arith.constant 0.176776692 : f32
    %18 = vector.broadcast %cst_9 : f32 to vector<8x32xf32>
    %19 = arith.mulf %15, %18 : vector<8x32xf32>
    %cst_10 = arith.constant dense<0.000000e+00> : vector<8x8xf32>
    %20 = tpu.matmul %19, %16, %cst_10 {dimension_numbers = #tpu.dot_dimension_numbers<[1], [1], [0], [0], [0, 0, 1, 0], [], []>} : vector<8x32xf32>, vector<8x32xf32>, vector<8x8xf32> -> vector<8x8xf32>
    %21 = tpu.iota {dimensions = array<i32: 0>} : vector<8x8xi32>
    %22 = vector.broadcast %1 : i32 to vector<8x8xi32>
    %23 = arith.addi %22, %21 : vector<8x8xi32>
    %24 = tpu.iota {dimensions = array<i32: 1>} : vector<8x8xi32>
    %25 = arith.cmpi sle, %24, %23 : vector<8x8xi32>
    %cst_11 = arith.constant 0xFF800000 : f32
    %26 = vector.broadcast %cst_11 : f32 to vector<8x8xf32>
    %27 = arith.select %25, %20, %26 : vector<8x8xi1>, vector<8x8xf32>
    %cst_12 = arith.constant dense<0xFF800000> : vector<8xf32>
    %28 = vector.multi_reduction <maximumf>, %27, %cst_12 [1] : vector<8x8xf32> to vector<8xf32>
    %29 = vector.shape_cast %28 : vector<8xf32> to vector<8x1xf32>
    %30 = vector.broadcast %29 : vector<8x1xf32> to vector<8x8xf32>
    %31 = arith.subf %27, %30 : vector<8x8xf32>
    %32 = math.exp %31 : vector<8x8xf32>
    %cst_13 = arith.constant dense<0.000000e+00> : vector<8xf32>
    %33 = vector.multi_reduction <add>, %32, %cst_13 [1] : vector<8x8xf32> to vector<8xf32>
    %34 = vector.shape_cast %33 : vector<8xf32> to vector<8x1xf32>
    %35 = tpu.reciprocal %34 {approx = true} : vector<8x1xf32> -> vector<8x1xf32>
    %36 = vector.broadcast %35 : vector<8x1xf32> to vector<8x8xf32>
    %37 = arith.mulf %32, %36 : vector<8x8xf32>
    %cst_14 = arith.constant dense<0.000000e+00> : vector<8x32xf32>
    %38 = tpu.matmul %37, %17, %cst_14 {dimension_numbers = #tpu.dot_dimension_numbers<[1], [0], [0], [1], [0, 0, 1, 1], [], []>} : vector<8x8xf32>, vector<8x32xf32>, vector<8x32xf32> -> vector<8x32xf32>
    %c0_15 = arith.constant 0 : index
    %c0_16 = arith.constant 0 : index
    %39 = vector.load %arg8[%c0_15, %c0_16] : memref<8x128xf32, #tpu.memory_space<vmem>>, vector<8x128xf32>
    %c0_17 = arith.constant 0 : index
    %c0_18 = arith.constant 0 : index
    %c0_19 = arith.constant 0 : index
    %40 = vector.load %arg5[%c0_17, %c0_18, %c0_19] : memref<1x32x128xf32, #tpu.memory_space<vmem>>, vector<1x32x128xf32>
    %41 = vector.shape_cast %40 : vector<1x32x128xf32> to vector<32x128xf32>
    %cst_20 = arith.constant dense<0.000000e+00> : vector<8x128xf32>
    %42 = tpu.matmul %38, %41, %cst_20 {dimension_numbers = #tpu.dot_dimension_numbers<[1], [0], [0], [1], [0, 0, 1, 1], [], []>} : vector<8x32xf32>, vector<32x128xf32>, vector<8x128xf32> -> vector<8x128xf32>
    %43 = arith.addf %39, %42 : vector<8x128xf32>
    %c0_21 = arith.constant 0 : index
    %c0_22 = arith.constant 0 : index
    %44 = vector.load %arg8[%c0_21, %c0_22] : memref<8x128xf32, #tpu.memory_space<vmem>>, vector<8x128xf32>
    tpu.vector_store %arg8[%c0_21, %c0_22], %43 {strides = array<i32>} : memref<8x128xf32, #tpu.memory_space<vmem>>, vector<8x128xf32>,
    %c3_i32 = arith.constant 3 : i32
    %45 = arith.cmpi eq, %arg2, %c3_i32 : i32
    %46 = arith.extui %45 : i1 to i32
    %c0_i32_23 = arith.constant 0 : i32
    %47 = arith.cmpi ne, %46, %c0_i32_23 : i32
    scf.if %47 {
      %c0_24 = arith.constant 0 : index
      %c0_25 = arith.constant 0 : index
      %48 = vector.load %arg8[%c0_24, %c0_25] : memref<8x128xf32, #tpu.memory_space<vmem>>, vector<8x128xf32>
      %c0_26 = arith.constant 0 : index
      %c0_27 = arith.constant 0 : index
      %49 = vector.load %arg6[%c0_26, %c0_27] : memref<1x128xf32, #tpu.memory_space<vmem>>, vector<1x128xf32>
      %50 = vector.broadcast %49 : vector<1x128xf32> to vector<8x128xf32>
      %51 = arith.addf %48, %50 : vector<8x128xf32>
      %c0_28 = arith.constant 0 : index
      %c0_29 = arith.constant 0 : index
      %c0_30 = arith.constant 0 : index
      %52 = vector.load %arg7[%c0_28, %c0_29, %c0_30] : memref<1x8x128xf32, #tpu.memory_space<vmem>>, vector<1x8x128xf32>
      %53 = vector.shape_cast %52 : vector<1x8x128xf32> to vector<8x128xf32>
      %54 = vector.shape_cast %51 : vector<8x128xf32> to vector<1x8x128xf32>
      tpu.vector_store %arg7[%c0_28, %c0_29, %c0_30], %54 {strides = array<i32>} : memref<1x8x128xf32, #tpu.memory_space<vmem>>, vector<1x8x128xf32>,
    } else {
    }
    return
  }
  func.func @transform_0(%arg0: i32, %arg1: i32, %arg2: i32) -> (i32, i32, i32) {
    %c0_i32 = arith.constant 0 : i32
    %c0_i32_0 = arith.constant 0 : i32
    %c0_i32_1 = arith.constant 0 : i32
    return %arg0, %c0_i32, %c0_i32_0 : i32, i32, i32
  }
  func.func @transform_1(%arg0: i32, %arg1: i32, %arg2: i32) -> (i32, i32, i32) {
    %c0_i32 = arith.constant 0 : i32
    %c0_i32_0 = arith.constant 0 : i32
    %c0_i32_1 = arith.constant 0 : i32
    return %arg2, %c0_i32, %c0_i32_0 : i32, i32, i32
  }
  func.func @transform_2(%arg0: i32, %arg1: i32, %arg2: i32) -> (i32, i32, i32) {
    %c0_i32 = arith.constant 0 : i32
    %c0_i32_0 = arith.constant 0 : i32
    %c0_i32_1 = arith.constant 0 : i32
    return %arg2, %c0_i32, %c0_i32_0 : i32, i32, i32
  }
  func.func @transform_3(%arg0: i32, %arg1: i32, %arg2: i32) -> (i32, i32) {
    %c0_i32 = arith.constant 0 : i32
    %c0_i32_0 = arith.constant 0 : i32
    %c0_i32_1 = arith.constant 0 : i32
    return %c0_i32, %c0_i32_0 : i32, i32
  }
  func.func @transform_4(%arg0: i32, %arg1: i32, %arg2: i32) -> (i32, i32, i32) {
    %c0_i32 = arith.constant 0 : i32
    %c0_i32_0 = arith.constant 0 : i32
    return %arg0, %arg1, %c0_i32 : i32, i32, i32
  }
}

</mosaic_0001>

<bundles_post_ra>
// kernel: tpu_custom_call.1
= control target key start
LH: loop header
LB: loop body
LE: loop exit
PB: predicated region body
PF: predicated region fallthrough
CT: control target
= control target key end

     0   :  { %9 = vsyncpa [#allocation4], 0  ;;  %s1062_s0 = inlined_call_operand.vmem [shape: f32[2,8,128], index: 0, kind: input, shape index: {}]   ;;  %s1063_s1 = inlined_call_operand.vmem [shape: f32[4,128,96], index: 1, kind: input, shape index: {}]   ;;  %s1064_s2 = inlined_call_operand.vmem [shape: f32[4,32,128], index: 2, kind: input, shape index: {}]   ;;  %s1065_s3 = inlined_call_operand.vmem [shape: f32[1,128], index: 3, kind: input, shape index: {}]   ;;  %s1066_s4 = inlined_call_operand.hbm [shape: f32[2,8,128], index: 4, kind: output, shape index: {}]  }
   0x1   :  { %11 = vsyncpa [#allocation4 + $0x1], 0  ;;  %s879_s15 = smov 0   ;;  %s881_s16 = smov 0  }
   0x2   :  { %s883_s17 = smov 0   ;;  %s885_s18 = smov 0  }
   0x3   :  { %s887_s19 = smov 0   ;;  %s889_s20 = smov 0  }
   0x4   :  { %s891_s21 = smov 0   ;;  %s893_s22 = smov 0  }
   0x5 LB: > { %1070 = sst [smem:[#allocation6_spill]] %s846_s21  ;;  %s615_s23 = sadd.s32 4294967295, %s850_s22   ;;  %s850_s22 = sphi %s893_s22, %s17_s22   ;;  %s846_s21 = sphi %s891_s21, %s1078_s21   ;;  %s842_s20 = sphi %s889_s20, %s1083_s20   ;;  %s838_s19 = sphi %s887_s19, %s1076_s19   ;;  %s834_s18 = sphi %s885_s18, %s1082_s18   ;;  %s830_s17 = sphi %s883_s17, %s1081_s17   ;;  %s826_s16 = sphi %s881_s16, %s1080_s16   ;;  %s822_s15 = sphi %s879_s15, %s1079_s15  }
   0x6   : > { %s616_s24 = sadd.s32 4294967294, %s850_s22   ;;  %s29_s25 = sadd.s32 1, %s842_s20 }
   0x7   : > { %p30_p0 = scmp.ge.s32.totalorder %s29_s25, 4  ;;  %s36_s26 = sadd.s32 1, %s846_s21 }
   0x8   : > { %p154_p1 = scmp.ne.s32.totalorder %s830_s17, %s826_s16  ;;  %p155_p2 = scmp.eq.s32.totalorder %s615_s23, 7 }
   0x9   : > { %s1085_s25 = smov (%p30_p0, %s29_s25), 0  ;;  %s1087_s26 = smov (!%p30_p0, %s36_s26), %s846_s21 }
   0xa   : > { %1071 = sst [smem:[#allocation7_spill]] %s1085_s25  ;;  %p928_p3 = por %p155_p2, %p154_p1 }
   0xb   : > { %p160_p4 = scmp.ne.s32.totalorder %s826_s16, %s822_s15  ;;  %p38_p5 = scmp.ge.s32.totalorder %s1087_s26, 2 }
   0xc   : > { %p161_p6 = scmp.eq.s32.totalorder %s616_s24, 7  ;;  %p619_p7 = scmp.ge.s32.totalorder %s850_s22, 1 }
   0xd   : > { %p205_p8 = scmp.lt.s32.totalorder %s850_s22, 9  ;;  %s1089_s26 = smov (%p38_p5, %s1087_s26), 0 }
   0xe   : > { %1073 = sst [smem:[#allocation8_spill]] %s1089_s26  ;;  %p938_p9 = por %p161_p6, %p160_p4 }
   0xf   : > { %p206_p10 = pnand %p619_p7, %p205_p8  ;;  %s139_s29 = ssub.s32 %s846_s21, %s1089_s26 }
  0x10   : > { %s144_s30 = sadd.s32 1, %s830_s17  ;;  %p142_p11 = scmp.eq.s32.totalorder %s139_s29, 0 }
  0x11   : > { %209 = sbr.rel (%p206_p10) target bundleno = 994 (0x3e2), region = 36  ;;  %s1068_s6 = sand.u32 (!%p206_p10), 1, %s826_s16  }
  0x12   : > { %s946_s5 = scalar_select %p142_p11, %s830_s17, %s144_s30  }
  0x13   : > { %p240_p12 = scmp.lt.s32.totalorder (!%p206_p10), %s838_s19, 1  ;;  %s952_s7 = sshll.u32 (!%p206_p10), %s1068_s6, 3 }
  0x14   : > { %p244_p13 = scmp.lt.s32.totalorder (!%p206_p10), %s834_s18, 3  ;;  %s239_s21 = scalar_lea.vmem (!%p206_p10), [#allocation3], %s952_s7 }
  0x15   : > { %p626_p0 = scmp.ne.s32.totalorder (!%p206_p10), %s834_s18, 0 }
  0x16   : > { %s241_s8 = scalar_select %p240_p12, %s838_s19, 1 }
  0x17   : > { %s245_s9 = scalar_select %p244_p13, %s834_s18, 3 }
  0x18   : > { %s621_s10 = sshll.u32 %s241_s8, 3  ;;  %258 = sbr.rel (%p626_p0) target bundleno = 31 (0x1f), region = 40 }
  0x19   : > { %s960_s13 = scalar_lea.vmem %s1062_s0, %s621_s10  ;;  %s636_s14 = sshll.u32 %s245_s9, 7 }
  0x1a   : > { %s965_s29 = scalar_lea.vmem %s1063_s1, %s636_s14  ;;  %s637_s30 = sshll.u32 %s245_s9, 5 }
  0x1b   : > { %s970_s25 = scalar_lea.vmem %s1064_s2, %s637_s30 }
  0x1d   : > { %v852_v0 = vmov 0.0  }
  0x1e   : > { %259 = vst [vmem:[#allocation2] sm:$0xff] %v852_v0 }
  0x1f PF: > { %v274_v1 = vld [vmem:[%s965_s29 + $0x70] sm:$0xff]  ;;  %v275_v2 = vld [vmem:[%s965_s29 + $0x78] sm:$0xff]  ;;  %s853_s26 = smov 96   ;;  %v272_v7 = vld [vmem:[%s965_s29 + $0x60] sm:$0xff]  ;;  %vm384_vm0 = vcmask 261120   ;;  %v411_v54 = vlaneseq  ;;  %vm419_vm2 = vcmask 64512  }
  0x20   : > { %v711_v3 = vpack.i.bf16 %v274_v1, %v275_v2  ;;  %v270_v4 = vld [vmem:[%s965_s29 + $0x50] sm:$0xff]  ;;  %v271_v5 = vld [vmem:[%s965_s29 + $0x58] sm:$0xff]  ;;  %363 = vmatpush.msra.mxu1 %v275_v2  ;;  %v273_v8 = vld [vmem:[%s965_s29 + $0x68] sm:$0xff]  ;;  %p631_p1 = scmp.ne.s32.totalorder %s834_s18, 3 }
  0x21   : > { %v721_v6 = vpack.i.bf16 %v270_v4, %v271_v5  ;;  %v266_v9 = vld [vmem:[%s965_s29 + $0x30] sm:$0xff]  ;;  %v267_v10 = vld [vmem:[%s965_s29 + $0x38] sm:$0xff]  ;;  %v268_v11 = vld [vmem:[%s965_s29 + $0x40] sm:$0xff]  ;;  %v716_v14 = vpack.i.bf16 %v272_v7, %v273_v8  ;;  %v412_v55 = vshrl.u32 %v411_v54, 7  ;;  %v416_v56 = vand.u32 127, %v411_v54 }
  0x22   : > { %712 = vrot.lane.b32.xlu0 %v711_v3, %s853_s26  ;;  %364 = vmatpush.msra.mxu1 %v274_v1  ;;  %v269_v12 = vld [vmem:[%s965_s29 + $0x48] sm:$0xff]  ;;  %v731_v13 = vpack.i.bf16 %v266_v9, %v267_v10  ;;  %v264_v16 = vld [vmem:[%s965_s29 + $0x20] sm:$0xff]  ;;  %v262_v19 = vld [vmem:[%s965_s29 + $0x10] sm:$0xff] }
  0x23   : > { %722 = vrot.lane.b32.xlu1 %v721_v6, %s853_s26  ;;  %v726_v15 = vpack.i.bf16 %v268_v11, %v269_v12  ;;  %v265_v17 = vld [vmem:[%s965_s29 + $0x28] sm:$0xff]  ;;  %v263_v20 = vld [vmem:[%s965_s29 + $0x18] sm:$0xff]  ;;  %v260_v21 = vld [vmem:[%s965_s29] sm:$0xff]  ;;  %vm417_vm1 = vcmp.le.s32.totalorder %v416_v56, %v412_v55 }
  0x24   : > { %365 = vmatpush.msra.mxu1 %v273_v8  ;;  %732 = vrot.lane.b32.xlu2 %v731_v13, %s853_s26  ;;  %v736_v18 = vpack.i.bf16 %v264_v16, %v265_v17  ;;  %v261_v22 = vld [vmem:[%s965_s29 + $0x8] sm:$0xff]  ;;  %v741_v23 = vpack.i.bf16 %v262_v19, %v263_v20  ;;  %v276_v29 = vld [vmem:[%s960_s13] sm:$0xff]  ;;  %v461_v1 = vld [vmem:[%s970_s25 + $0x18] sm:$0xff] }
  0x25   : > { %v746_v24 = vpack.i.bf16 %v260_v21, %v261_v22  ;;  %v460_v2 = vld [vmem:[%s970_s25 + $0x10] sm:$0xff]  ;;  %v459_v3 = vld [vmem:[%s970_s25 + $0x8] sm:$0xff] }
  0x26   : > { %366 = vmatpush.msra.mxu1 %v272_v7 }
  0x28   : > { %367 = vmatpush.msra.mxu1 %v271_v5 }
  0x2a   : > { %717 = vrot.lane.b32.xlu0 %v716_v14, %s853_s26  ;;  %368 = vmatpush.msra.mxu1 %v270_v4  ;;  %v458_v4 = vld [vmem:[%s970_s25] sm:$0xff] }
  0x2b   : > { %727 = vrot.lane.b32.xlu1 %v726_v15, %s853_s26 }
  0x2c   : > { %369 = vmatpush.msra.mxu1 %v269_v12  ;;  %737 = vrot.lane.b32.xlu2 %v736_v18, %s853_s26 }
  0x2e   : > { %370 = vmatpush.msra.mxu1 %v268_v11 }
  0x30   : > { %371 = vmatpush.msra.mxu1 %v267_v10 }
  0x32   : > { %742 = vrot.lane.b32.xlu0 %v741_v23, %s853_s26  ;;  %372 = vmatpush.msra.mxu1 %v266_v9  ;;  %v457_v9 = vld [vmem:[#allocation2] sm:$0xff] }
  0x33   : > { %747 = vrot.lane.b32.xlu1 %v746_v24, %s853_s26 }
  0x34   : > { %373 = vmatpush.msra.mxu1 %v265_v17 }
  0x36   : > { %374 = vmatpush.msra.mxu1 %v264_v16 }
  0x38   : > { %375 = vmatpush.msra.mxu1 %v263_v20 }
  0x3a   : > { %376 = vmatpush.msra.mxu1 %v262_v19 }
  0x3c   : > { %377 = vmatpush.msra.mxu1 %v261_v22 }
  0x3e   : > { %378 = vmatpush.msra.mxu1 %v260_v21 }
  0x3f   : > { %379 = vmatmul.f32.vlgmr.msra.gmra.mxu1 %v276_v29 }
  0x7e   : > { %v733_v32 = vpop.permute.xlu2 %732 }
  0x7f   : > { %v734_v40 = vunpack.i.l.bf16 %v733_v32  ;;  %v735_v41 = vunpack.i.h.bf16 %v733_v32 }
  0x86   : > { %v738_v39 = vpop.permute.xlu2 %737 }
  0x87   : > { %v739_v42 = vunpack.i.l.bf16 %v738_v39  ;;  %v740_v44 = vunpack.i.h.bf16 %v738_v39 }
  0x94   : > { %v713_v25 = vpop.permute.xlu0 %712 }
  0x95   : > { %v714_v26 = vunpack.i.l.bf16 %v713_v25  ;;  %v723_v27 = vpop.permute.xlu1 %722  ;;  %v715_v28 = vunpack.i.h.bf16 %v713_v25 }
  0x96   : > { %v724_v35 = vunpack.i.l.bf16 %v723_v27  ;;  %v725_v36 = vunpack.i.h.bf16 %v723_v27 }
  0x97   : > { %343 = vmatpush.msra.mxu0 %v714_v26 }
  0x99   : > { %344 = vmatpush.msra.mxu0 %v715_v28 }
  0x9c   : > { %v718_v30 = vpop.permute.xlu0 %717 }
  0x9d   : > { %v719_v31 = vunpack.i.l.bf16 %v718_v30  ;;  %v720_v33 = vunpack.i.h.bf16 %v718_v30  ;;  %v728_v34 = vpop.permute.xlu1 %727 }
  0x9e   : > { %v729_v37 = vunpack.i.l.bf16 %v728_v34  ;;  %v730_v38 = vunpack.i.h.bf16 %v728_v34 }
  0x9f   : > { %345 = vmatpush.msra.mxu0 %v719_v31 }
  0xa1   : > { %346 = vmatpush.msra.mxu0 %v720_v33 }
  0xa3   : > { %347 = vmatpush.msra.mxu0 %v724_v35 }
  0xa4   : > { %v743_v43 = vpop.permute.xlu0 %742 }
  0xa5   : > { %348 = vmatpush.msra.mxu0 %v725_v36  ;;  %v744_v45 = vunpack.i.l.bf16 %v743_v43  ;;  %v748_v46 = vpop.permute.xlu1 %747  ;;  %v745_v47 = vunpack.i.h.bf16 %v743_v43 }
  0xa6   : > { %v749_v48 = vunpack.i.l.bf16 %v748_v46  ;;  %v750_v49 = vunpack.i.h.bf16 %v748_v46 }
  0xa7   : > { %349 = vmatpush.msra.mxu0 %v729_v37 }
  0xa9   : > { %350 = vmatpush.msra.mxu0 %v730_v38 }
  0xab   : > { %351 = vmatpush.msra.mxu0 %v734_v40 }
  0xad   : > { %352 = vmatpush.msra.mxu0 %v735_v41 }
  0xaf   : > { %353 = vmatpush.msra.mxu0 %v739_v42 }
  0xb1   : > { %354 = vmatpush.msra.mxu0 %v740_v44 }
  0xb3   : > { %355 = vmatpush.msra.mxu0 %v744_v45 }
  0xb5   : > { %356 = vmatpush.msra.mxu0 %v745_v47 }
  0xb7   : > { %357 = vmatpush.msra.mxu0 %v749_v48 }
  0xb9   : > { %358 = vmatpush.msra.mxu0 %v750_v49 }
  0xba   : > { %359 = vmatmul.f32.vlgmr.msra.gmra.mxu0 %v276_v29 }
  0xbc   : > { %v380_v50 = vpop.f32.mrf.mxu1 }
  0xbd   : > { %v383_v52 = vmul.f32 0.17677669, %v380_v50 }
 0x137   : > { %v360_v51 = vpop.f32.mrf.mxu0 }
 0x138   : > { %431 = vrot.lane.b32.xlu1 %v360_v51, %s853_s26  ;;  %627 = vmatpush.xpose.msk.msra.mxu2 %vm384_vm0, %v360_v51 }
 0x13b   : > { %628 = vmatmul.msk.f32.vlgmr.msra.gmra.mxu2 %vm384_vm0, %v383_v52 }
 0x1aa   : > { %v432_v53 = vpop.permute.xlu1 %431 }
 0x1ab   : > { %452 = vmatpush.msra.mxu3 %v432_v53 }
 0x1ad   : > { %477 = vmatpush.msrb.mxu3 %v461_v1 }
 0x1af   : > { %478 = vmatpush.msrb.mxu3 %v460_v2 }
 0x1b1   : > { %479 = vmatpush.msrb.mxu3 %v459_v3 }
 0x1b3   : > { %480 = vmatpush.msrb.mxu3 %v458_v4 }
 0x1be   : > { %v408_v57 = vpop.f32.mrf.mxu2 }
 0x1bf   : > { %v418_v58 = vsel %vm417_vm1, %v408_v57, -inf }
 0x1c0   : > { %v420_v59 = vsel %vm419_vm2, %v418_v58, -inf }
 0x1c1   : > { %421 = vmax.xlane.f32.xlu2 %v420_v59 }
 0x234   : > { %v422_v60 = vpop.xlane.xlu2 %421 }
 0x235   : > { %v423_v61 = vsub.f32 %v418_v58, %v422_v60 }
 0x237   : > { %v424_v62 = vmul.f32 1.442695, %v423_v61 }
 0x239   : > { %751 = vpow2.f32 %v424_v62 }
 0x23f   : > { %v752_v63 = vpop.eup %751 }
 0x240   : > { %v426_v0 = vsel %vm419_vm2, %v752_v63, 0.0 }
 0x241   : > { %427 = vadd.xlane.f32.xlu0 %v426_v0 }
 0x2b4   : > { %v428_v5 = vpop.xlane.xlu0 %427 }
 0x2b5   : > { %753 = vrcp.f32 %v428_v5 }
 0x2bb   : > { %v754_v6 = vpop.eup %753 }
 0x2bc   : > { %v430_v7 = vmul.f32 %v754_v6, %v752_v63 }
 0x2be   : > { %629 = vmatmul.msk.f32.vlgmr.msra.gmra.mxu3 %vm419_vm2, %v430_v7 }
 0x341   : > { %v454_v8 = vpop.f32.mrf.mxu3 }
 0x342   : > { %630 = vmatmul.msk.f32.vlgmr.msrb.gmra.mxu3 %vm384_vm0, %v454_v8 }
 0x3c4   : > { %490 = sbr.rel (%p631_p1) target bundleno = 979 (0x3d3), region = 44 }
 0x3c5   : > { %v482_v10 = vpop.f32.mrf.mxu3 }
 0x3c6   : > { %v485_v11 = vadd.f32 %v482_v10, %v457_v9 }
 0x3c8   : > { %486 = vst [vmem:[#allocation2] sm:$0xff] %v485_v11 }
 0x3c9   : > { %v755_v13 = vld [vmem:[%s1065_s3] ss:$0 sm:$0xff] }
 0x3cf   : > { %v491_v12 = vld [vmem:[#allocation2] sm:$0xff] }
 0x3d0   : > { %v496_v14 = vadd.f32 %v755_v13, %v491_v12 }
 0x3d2   : > { %497 = vst [vmem:[%s239_s21] sm:$0xff] %v496_v14 }
 0x3d3 PF: > { %s633_s8 = sshll.u32 %s838_s19, 3  ;;  %s512_s11 = sshll.u32 %s239_s21, 4  ;;  %s513_s11 = int_to_ptr.vmem [resolvable:$true] %s512_s11 }
 0x3d4   : > { %s510_s18 = scalar_lea.hbm %s1066_s4, %s633_s8  ;;  %s1075_s13 = sand.u32 1, %s826_s16  }
 0x3d5   : > { %s514_s12 = sshll.u32 %s510_s18, 4  ;;  %s499_s14 = scalar_lea.sflag [#allocation4], %s1075_s13  ;;  %s515_s12 = int_to_ptr.hbm [resolvable:$true] %s514_s12 }
 0x3d6   : > { %s770_s23 = sshra.s32 %s515_s12, 4  ;;  %s776_s30 = scalar_lea.hbm %s1066_s4, 16  ;;  %s771_s23 = int_to_ptr.hbm [resolvable:$true] %s770_s23 }
 0x3d7   : > { %s772_s24 = scalar_lea.hbm %s771_s23, 8  ;;  %p777_p6 = scmp.lt.s32.totalorder %s771_s23, %s1066_s4 }
 0x3d8   : > { %p773_p2 = scmp.ne.s32.totalorder %s771_s23, %s772_s24  ;;  %p778_p7 = scmp.lt.s32.totalorder %s776_s30, %s772_s24 }
 0x3da   : > { %p774_p4 = pnand %p773_p2, %p928_p3  ;;  %p779_p8 = por %p778_p7, %p777_p6 }
 0x3dc   : > { %p775_p5 = pneg %p774_p4 }
 0x3de   : > { %p780_p10 = pnand %p779_p8, %p775_p5 }
 0x3e0   : > { %783 = shalt.err (!%p780_p10)
}
 0x3e1   : > { %638 = dma.vmem_to_hbm [thread:$0]  (%p928_p3), %s513_s11, 128, %s515_s12, %s499_s14  }
 0x3e2 PF: > { %p644_p11 = scmp.ge.s32.totalorder %s850_s22, 2  ;;  %s526_s21 = sand.u32 1, %s822_s15  }
 0x3e3   : > { %s527_s7 = scalar_lea.sflag [#allocation4], %s526_s21 }
 0x3e4   : > { %p641_p12 = pnand %p644_p11, %p938_p9 }
 0x3e6   : > { %p642_p13 = pneg %p641_p12 }
 0x3e8   : > { %817 = dma.done.wait (%p642_p13), %s527_s7, 128  }
 0x3e9   : > { %819 = vsyncadd (%p642_p13), %s527_s7, 4294967168  ;;  %s17_s22 = sadd.s32 1, %s850_s22   ;;  %s1076_s19 = sld [smem:[#allocation6_spill]] }
 0x3ea   : > { %p14_p0 = scmp.ge.s32.totalorder %s17_s22, 10   ;;  %s1077_s27 = sld [smem:[#allocation7_spill]] }
 0x3eb   : > { %s1078_s21 = sld [smem:[#allocation8_spill]]  ;;  %s1079_s15 = smov %s826_s16 }
 0x3ec   : > { %s1080_s16 = smov %s830_s17  ;;  %s1081_s17 = smov %s946_s5 }
 0x3ed   : > { %s1082_s18 = smov %s842_s20  ;;  %16 = sbr.rel (!%p14_p0) target bundleno = 5 (0x5), region = 86 }
 0x3f0   : > { %s1083_s20 = smov %s1077_s27 }
 0x3f2   :  { %533 = vsyncpa [#allocation4], 1 }
 0x3f3   :  { %535 = vsyncpa [#allocation4 + $0x1], 1 }

</bundles_post_ra>
